<compile_context>
chip_gen: v7x
topology: tpu7x:2x2x1
jax: 0.10.0
libtpu: 0.0.40
codegen_flags: <defaults>
</compile_context>

<pallas_src>
import functools

import jax
import jax.numpy as jnp
from jax.experimental import pallas as pl
from jax.experimental.pallas import tpu as pltpu

HIDDEN = 128
TB_MAX = 1024        # max batch tile (rows per grid step)
NEG_LARGE = -1e30    # finite "-inf" for padded logits (exp underflows to 0)
FC1_VPU_MAX_S = 16   # state dims at or below this use the VPU fc1 path


def _round_up(x, m):
    return ((x + m - 1) // m) * m


def _cdiv(a, b):
    return (a + b - 1) // b


@functools.lru_cache(maxsize=1)
def _tanh_dtype():
    """bf16 tanh on chips with bf16 VPU/EUP (v6e/v7x); f32 on v5e and older."""
    try:
        kind = jax.devices()[0].device_kind.lower()
    except Exception:
        return jnp.float32
    if any(tag in kind for tag in ("v2", "v3", "v4", "v5")):
        return jnp.float32
    return jnp.bfloat16


def _fc1_on_vpu(state_dim):
    return state_dim <= FC1_VPU_MAX_S


def reinforce_fwd_kernel(x_ref, w1_ref, b1_ref, w2_ref, b2_ref, w3_ref, b3_ref,
                         out_ref, *, fc1_on_vpu, tanh_dtype):
    """fc1 -> tanh -> fc2 -> tanh -> fc3 -> softmax(last axis), one batch tile."""
    if fc1_on_vpu:
        # Contraction depth = state_dim is tiny: VPU broadcast multiply-adds in
        # f32, no MXU push/drain round-trip.
        x = x_ref[...]                                     # (TB, S) f32
        w1 = w1_ref[...]                                   # (S, H) f32
        h1 = x[:, 0:1] * w1[0:1, :] + b1_ref[...]
        for s in range(1, w1.shape[0]):
            h1 = h1 + x[:, s:s + 1] * w1[s:s + 1, :]
    else:
        # MXU path for larger state dims (weights already bf16 from wrapper).
        h1 = jnp.dot(x_ref[...].astype(jnp.bfloat16), w1_ref[...],
                     preferred_element_type=jnp.float32) + b1_ref[...]
    h1 = jnp.tanh(h1.astype(tanh_dtype)).astype(jnp.bfloat16)

    # fc2 + tanh (w2 is pre-cast bf16; accumulate f32)
    h2 = jnp.dot(h1, w2_ref[...],
                 preferred_element_type=jnp.float32) + b2_ref[...]
    h2 = jnp.tanh(h2.astype(tanh_dtype)).astype(jnp.bfloat16)

    # fc3: padded action columns carry a NEG_LARGE bias -> exp() == 0
    logits = jnp.dot(h2, w3_ref[...],
                     preferred_element_type=jnp.float32) + b3_ref[...]

    # numerically stable softmax over the (narrow, padded) action axis
    m = jnp.max(logits, axis=-1, keepdims=True)
    e = jnp.exp(logits - m)
    denom = jnp.sum(e, axis=-1, keepdims=True)
    out_ref[...] = (e / denom).astype(out_ref.dtype)   # exact divide (probs feed log-probs)


def reinforce_forward(x, params):
    """Batched policy forward: returns softmax action probabilities (B, A)."""
    w1, b1, w2, b2, w3, b3 = params
    B, S = x.shape
    A = w3.shape[1]
    A_out = max(8, _round_up(A, 8))           # narrow output slab (not 128-wide)
    fc1_on_vpu = _fc1_on_vpu(S)
    tanh_dtype = _tanh_dtype()

    # --- pad action axis of fc3; padded logits get a large negative bias ------
    w3p = jnp.zeros((HIDDEN, A_out), jnp.float32).at[:, :A].set(w3)
    b3p = jnp.full((1, A_out), NEG_LARGE, jnp.float32).at[:, :A].set(b3)

    # --- hoisted bf16 casts for MXU operands (biases stay f32) ----------------
    w1k = w1 if fc1_on_vpu else w1.astype(jnp.bfloat16)
    w2k = w2.astype(jnp.bfloat16)
    w3k = w3p.astype(jnp.bfloat16)

    # --- batch tile: as large as possible (<= TB_MAX) with minimal padding ----
    n_tiles = _cdiv(B, TB_MAX)
    TB = _round_up(_cdiv(B, n_tiles), 8)
    Bp = n_tiles * TB
    if Bp != B:
        x = jnp.zeros((Bp, S), x.dtype).at[:B].set(x)

    kernel = functools.partial(reinforce_fwd_kernel,
                               fc1_on_vpu=fc1_on_vpu, tanh_dtype=tanh_dtype)

    out = pl.pallas_call(
        kernel,
        out_shape=jax.ShapeDtypeStruct((Bp, A_out), jnp.float32),
        grid_spec=pltpu.PrefetchScalarGridSpec(
            num_scalar_prefetch=0,
            grid=(n_tiles,),
            in_specs=[
                # activations: tiled over the batch grid (double-buffered DMA)
                pl.BlockSpec((TB, S), lambda i: (i, 0)),
                # weights/biases: constant index_map -> fetched once, VMEM-resident
                pl.BlockSpec((S, HIDDEN), lambda i: (0, 0)),
                pl.BlockSpec((1, HIDDEN), lambda i: (0, 0)),
                pl.BlockSpec((HIDDEN, HIDDEN), lambda i: (0, 0)),
                pl.BlockSpec((1, HIDDEN), lambda i: (0, 0)),
                pl.BlockSpec((HIDDEN, A_out), lambda i: (0, 0)),
                pl.BlockSpec((1, A_out), lambda i: (0, 0)),
            ],
            out_specs=pl.BlockSpec((TB, A_out), lambda i: (i, 0)),
        ),
        compiler_params=pltpu.CompilerParams(
            # batch tiles are independent -> shard grid across TCs on v7x.
            # TODO(synk): on v7x confirm megacore sharding via profile; fall back
            # to pltpu.CORE_PARALLEL / core_map if "parallel" does not split it.
            dimension_semantics=("parallel",),
        ),
    )(x, w1k, b1, w2k, b2, w3k, b3p)

    return out[:B, :A]


def init_params(key, state_shape, num_actions):
    """PyTorch-style nn.Linear init: U(-1/sqrt(fan_in), +1/sqrt(fan_in)).

    Weights stored transposed relative to PyTorch ((in, out)); biases are 2-D
    (1, out) for TPU-friendly layouts.
    """
    def linear(key, fan_in, fan_out):
        kw, kb = jax.random.split(key)
        bound = 1.0 / jnp.sqrt(fan_in)
        w = jax.random.uniform(kw, (fan_in, fan_out), jnp.float32, -bound, bound)
        b = jax.random.uniform(kb, (1, fan_out), jnp.float32, -bound, bound)
        return w, b

    k1, k2, k3 = jax.random.split(key, 3)
    w1, b1 = linear(k1, state_shape, HIDDEN)
    w2, b2 = linear(k2, HIDDEN, HIDDEN)
    w3, b3 = linear(k3, HIDDEN, num_actions)
    return (w1, b1, w2, b2, w3, b3)


def reference_forward_f32(x, params):
    """Pure-JAX f32 reference (PyTorch-semantics)."""
    w1, b1, w2, b2, w3, b3 = params
    h = jnp.tanh(x @ w1 + b1)
    h = jnp.tanh(h @ w2 + b2)
    return jax.nn.softmax(h @ w3 + b3, axis=-1)


def reference_forward_kernel_math(x, params):
    """Pure-JAX reference matching the kernel's mixed-precision math."""
    w1, b1, w2, b2, w3, b3 = params
    bf = jnp.bfloat16
    td = _tanh_dtype()
    if _fc1_on_vpu(x.shape[1]):
        h = x @ w1 + b1                                   # f32 VPU path
    else:
        h = jnp.dot(x.astype(bf), w1.astype(bf),
                    preferred_element_type=jnp.float32) + b1
    h = jnp.tanh(h.astype(td)).astype(bf)
    h = jnp.dot(h, w2.astype(bf), preferred_element_type=jnp.float32) + b2
    h = jnp.tanh(h.astype(td)).astype(bf)
    logits = jnp.dot(h, w3.astype(bf), preferred_element_type=jnp.float32) + b3
    return jax.nn.softmax(logits, axis=-1)


# TODO(synk): get_action / update_weight (np.random.choice sampling, advisor
# mixing, optimizer loop, REINFORCE loss) are host-side training logic with no
# Pallas equivalent; only the nn.Module forward pass is implemented as a kernel.

if __name__ == "__main__":
    # Small CartPole-like shapes: state_shape=4, num_actions=2.
    state_shape = 4
    num_actions = 2

    key = jax.random.PRNGKey(0)
    k_params, k_x1, k_x2 = jax.random.split(key, 3)
    params = init_params(k_params, state_shape, num_actions)

    # --- case 1: tiny gym-style batch -----------------------------------------
    x = jax.random.normal(k_x1, (2, state_shape), jnp.float32)
    probs = jax.block_until_ready(reinforce_forward(x, params))
    assert probs.shape == (2, num_actions)
    assert jnp.allclose(probs, reference_forward_kernel_math(x, params),
                        atol=1e-2, rtol=1e-2)
    assert jnp.allclose(probs, reference_forward_f32(x, params),
                        atol=3e-2, rtol=3e-2)
    assert jnp.allclose(jnp.sum(probs, axis=-1), 1.0, atol=1e-4)

    # --- case 2: ragged batch (exercises batch padding path) ------------------
    x2 = jax.random.normal(k_x2, (37, state_shape), jnp.float32)
    probs2 = jax.block_until_ready(reinforce_forward(x2, params))
    assert probs2.shape == (37, num_actions)
    assert jnp.allclose(probs2, reference_forward_kernel_math(x2, params),
                        atol=1e-2, rtol=1e-2)
    assert jnp.allclose(probs2, reference_forward_f32(x2, params),
                        atol=3e-2, rtol=3e-2)
    assert jnp.allclose(jnp.sum(probs2, axis=-1), 1.0, atol=1e-4)

    print("KERNEL_OK")
</pallas_src>

<mosaic_0001>
module attributes {stable_mosaic.version = 11 : i64} {
  func.func @reinforce_fwd_kernel(%arg0: i32, %arg1: memref<8x4xf32, #tpu.memory_space<vmem>>, %arg2: memref<4x128xf32, #tpu.memory_space<vmem>>, %arg3: memref<1x128xf32, #tpu.memory_space<vmem>>, %arg4: memref<128x128xbf16, #tpu.memory_space<vmem>>, %arg5: memref<1x128xf32, #tpu.memory_space<vmem>>, %arg6: memref<128x8xbf16, #tpu.memory_space<vmem>>, %arg7: memref<1x8xf32, #tpu.memory_space<vmem>>, %arg8: memref<8x8xf32, #tpu.memory_space<vmem>>) attributes {dimension_semantics = [#tpu.dimension_semantics<parallel>], iteration_bounds = array<i64: 1>, scalar_prefetch = 0 : i64, scratch_operands = 0 : i64, tpu.core_type = #tpu.core_type<tc>, window_params = [{transform_indices = @transform_0, window_bounds = array<i64: 8, 4>}, {pipeline_mode = #tpu.pipeline_mode<synchronous>, transform_indices = @transform_1, window_bounds = array<i64: 4, 128>}, {pipeline_mode = #tpu.pipeline_mode<synchronous>, transform_indices = @transform_2, window_bounds = array<i64: 1, 128>}, {pipeline_mode = #tpu.pipeline_mode<synchronous>, transform_indices = @transform_3, window_bounds = array<i64: 128, 128>}, {pipeline_mode = #tpu.pipeline_mode<synchronous>, transform_indices = @transform_4, window_bounds = array<i64: 1, 128>}, {pipeline_mode = #tpu.pipeline_mode<synchronous>, transform_indices = @transform_5, window_bounds = array<i64: 128, 8>}, {pipeline_mode = #tpu.pipeline_mode<synchronous>, transform_indices = @transform_6, window_bounds = array<i64: 1, 8>}, {transform_indices = @transform_7, window_bounds = array<i64: 8, 8>}]} {
    %c0 = arith.constant 0 : index
    %c0_0 = arith.constant 0 : index
    %0 = vector.load %arg1[%c0, %c0_0] : memref<8x4xf32, #tpu.memory_space<vmem>>, vector<8x4xf32>
    %c0_1 = arith.constant 0 : index
    %c0_2 = arith.constant 0 : index
    %1 = vector.load %arg2[%c0_1, %c0_2] : memref<4x128xf32, #tpu.memory_space<vmem>>, vector<4x128xf32>
    %2 = vector.extract_strided_slice %0 {offsets = [0, 0], sizes = [8, 1], strides = [1, 1]} : vector<8x4xf32> to vector<8x1xf32>
    %3 = vector.extract_strided_slice %1 {offsets = [0, 0], sizes = [1, 128], strides = [1, 1]} : vector<4x128xf32> to vector<1x128xf32>
    %4 = vector.broadcast %2 : vector<8x1xf32> to vector<8x128xf32>
    %5 = vector.broadcast %3 : vector<1x128xf32> to vector<8x128xf32>
    %6 = arith.mulf %4, %5 : vector<8x128xf32>
    %c0_3 = arith.constant 0 : index
    %c0_4 = arith.constant 0 : index
    %7 = vector.load %arg3[%c0_3, %c0_4] : memref<1x128xf32, #tpu.memory_space<vmem>>, vector<1x128xf32>
    %8 = vector.broadcast %7 : vector<1x128xf32> to vector<8x128xf32>
    %9 = arith.addf %6, %8 : vector<8x128xf32>
    %10 = vector.extract_strided_slice %0 {offsets = [0, 1], sizes = [8, 1], strides = [1, 1]} : vector<8x4xf32> to vector<8x1xf32>
    %11 = vector.extract_strided_slice %1 {offsets = [1, 0], sizes = [1, 128], strides = [1, 1]} : vector<4x128xf32> to vector<1x128xf32>
    %12 = vector.broadcast %10 : vector<8x1xf32> to vector<8x128xf32>
    %13 = vector.broadcast %11 : vector<1x128xf32> to vector<8x128xf32>
    %14 = arith.mulf %12, %13 : vector<8x128xf32>
    %15 = arith.addf %9, %14 : vector<8x128xf32>
    %16 = vector.extract_strided_slice %0 {offsets = [0, 2], sizes = [8, 1], strides = [1, 1]} : vector<8x4xf32> to vector<8x1xf32>
    %17 = vector.extract_strided_slice %1 {offsets = [2, 0], sizes = [1, 128], strides = [1, 1]} : vector<4x128xf32> to vector<1x128xf32>
    %18 = vector.broadcast %16 : vector<8x1xf32> to vector<8x128xf32>
    %19 = vector.broadcast %17 : vector<1x128xf32> to vector<8x128xf32>
    %20 = arith.mulf %18, %19 : vector<8x128xf32>
    %21 = arith.addf %15, %20 : vector<8x128xf32>
    %22 = vector.extract_strided_slice %0 {offsets = [0, 3], sizes = [8, 1], strides = [1, 1]} : vector<8x4xf32> to vector<8x1xf32>
    %23 = vector.extract_strided_slice %1 {offsets = [3, 0], sizes = [1, 128], strides = [1, 1]} : vector<4x128xf32> to vector<1x128xf32>
    %24 = vector.broadcast %22 : vector<8x1xf32> to vector<8x128xf32>
    %25 = vector.broadcast %23 : vector<1x128xf32> to vector<8x128xf32>
    %26 = arith.mulf %24, %25 : vector<8x128xf32>
    %27 = arith.addf %21, %26 : vector<8x128xf32>
    %28 = arith.truncf %27 : vector<8x128xf32> to vector<8x128xbf16>
    %29 = math.tanh %28 : vector<8x128xbf16>
    %c0_5 = arith.constant 0 : index
    %c0_6 = arith.constant 0 : index
    %30 = vector.load %arg4[%c0_5, %c0_6] : memref<128x128xbf16, #tpu.memory_space<vmem>>, vector<128x128xbf16>
    %cst = arith.constant dense<0.000000e+00> : vector<8x128xf32>
    %31 = tpu.matmul %29, %30, %cst {dimension_numbers = #tpu.dot_dimension_numbers<[1], [0], [0], [1], [0, 0, 1, 1], [], []>} : vector<8x128xbf16>, vector<128x128xbf16>, vector<8x128xf32> -> vector<8x128xf32>
    %c0_7 = arith.constant 0 : index
    %c0_8 = arith.constant 0 : index
    %32 = vector.load %arg5[%c0_7, %c0_8] : memref<1x128xf32, #tpu.memory_space<vmem>>, vector<1x128xf32>
    %33 = vector.broadcast %32 : vector<1x128xf32> to vector<8x128xf32>
    %34 = arith.addf %31, %33 : vector<8x128xf32>
    %35 = arith.truncf %34 : vector<8x128xf32> to vector<8x128xbf16>
    %36 = math.tanh %35 : vector<8x128xbf16>
    %c0_9 = arith.constant 0 : index
    %c0_10 = arith.constant 0 : index
    %37 = vector.load %arg6[%c0_9, %c0_10] : memref<128x8xbf16, #tpu.memory_space<vmem>>, vector<128x8xbf16>
    %cst_11 = arith.constant dense<0.000000e+00> : vector<8x8xf32>
    %38 = tpu.matmul %36, %37, %cst_11 {dimension_numbers = #tpu.dot_dimension_numbers<[1], [0], [0], [1], [0, 0, 1, 1], [], []>} : vector<8x128xbf16>, vector<128x8xbf16>, vector<8x8xf32> -> vector<8x8xf32>
    %c0_12 = arith.constant 0 : index
    %c0_13 = arith.constant 0 : index
    %39 = vector.load %arg7[%c0_12, %c0_13] : memref<1x8xf32, #tpu.memory_space<vmem>>, vector<1x8xf32>
    %40 = vector.broadcast %39 : vector<1x8xf32> to vector<8x8xf32>
    %41 = arith.addf %38, %40 : vector<8x8xf32>
    %cst_14 = arith.constant dense<0xFF800000> : vector<8xf32>
    %42 = vector.multi_reduction <maximumf>, %41, %cst_14 [1] : vector<8x8xf32> to vector<8xf32>
    %43 = vector.shape_cast %42 : vector<8xf32> to vector<8x1xf32>
    %44 = vector.broadcast %43 : vector<8x1xf32> to vector<8x8xf32>
    %45 = arith.subf %41, %44 : vector<8x8xf32>
    %46 = math.exp %45 : vector<8x8xf32>
    %cst_15 = arith.constant dense<0.000000e+00> : vector<8xf32>
    %47 = vector.multi_reduction <add>, %46, %cst_15 [1] : vector<8x8xf32> to vector<8xf32>
    %48 = vector.shape_cast %47 : vector<8xf32> to vector<8x1xf32>
    %49 = vector.broadcast %48 : vector<8x1xf32> to vector<8x8xf32>
    %50 = arith.divf %46, %49 : vector<8x8xf32>
    %c0_16 = arith.constant 0 : index
    %c0_17 = arith.constant 0 : index
    %51 = vector.load %arg8[%c0_16, %c0_17] : memref<8x8xf32, #tpu.memory_space<vmem>>, vector<8x8xf32>
    tpu.vector_store %arg8[%c0_16, %c0_17], %50 {strides = array<i32>} : memref<8x8xf32, #tpu.memory_space<vmem>>, vector<8x8xf32>,
    return
  }
  func.func @transform_0(%arg0: i32) -> (i32, i32) {
    %c0_i32 = arith.constant 0 : i32
    %c0_i32_0 = arith.constant 0 : i32
    return %arg0, %c0_i32 : i32, i32
  }
  func.func @transform_1(%arg0: i32) -> (i32, i32) {
    %c0_i32 = arith.constant 0 : i32
    %c0_i32_0 = arith.constant 0 : i32
    %c0_i32_1 = arith.constant 0 : i32
    return %c0_i32, %c0_i32_0 : i32, i32
  }
  func.func @transform_2(%arg0: i32) -> (i32, i32) {
    %c0_i32 = arith.constant 0 : i32
    %c0_i32_0 = arith.constant 0 : i32
    %c0_i32_1 = arith.constant 0 : i32
    return %c0_i32, %c0_i32_0 : i32, i32
  }
  func.func @transform_3(%arg0: i32) -> (i32, i32) {
    %c0_i32 = arith.constant 0 : i32
    %c0_i32_0 = arith.constant 0 : i32
    %c0_i32_1 = arith.constant 0 : i32
    return %c0_i32, %c0_i32_0 : i32, i32
  }
  func.func @transform_4(%arg0: i32) -> (i32, i32) {
    %c0_i32 = arith.constant 0 : i32
    %c0_i32_0 = arith.constant 0 : i32
    %c0_i32_1 = arith.constant 0 : i32
    return %c0_i32, %c0_i32_0 : i32, i32
  }
  func.func @transform_5(%arg0: i32) -> (i32, i32) {
    %c0_i32 = arith.constant 0 : i32
    %c0_i32_0 = arith.constant 0 : i32
    %c0_i32_1 = arith.constant 0 : i32
    return %c0_i32, %c0_i32_0 : i32, i32
  }
  func.func @transform_6(%arg0: i32) -> (i32, i32) {
    %c0_i32 = arith.constant 0 : i32
    %c0_i32_0 = arith.constant 0 : i32
    %c0_i32_1 = arith.constant 0 : i32
    return %c0_i32, %c0_i32_0 : i32, i32
  }
  func.func @transform_7(%arg0: i32) -> (i32, i32) {
    %c0_i32 = arith.constant 0 : i32
    %c0_i32_0 = arith.constant 0 : i32
    return %arg0, %c0_i32 : i32, i32
  }
}

</mosaic_0001>

<bundles_post_ra>
// kernel: tpu_custom_call.1
= control target key start
LH: loop header
LB: loop body
LE: loop exit
PB: predicated region body
PF: predicated region fallthrough
CT: control target
= control target key end

     0   :  { %v468_v2 = vmov 0   ;;  %v469_v3 = vmov 2   ;;  %v470_v4 = vmov 0.0   ;;  %v471_v6 = vmov 1   ;;  %s611_s0 = inlined_call_operand.vmem [shape: f32[8,4], index: 0, kind: input, shape index: {}]   ;;  %s612_s1 = inlined_call_operand.vmem [shape: f32[4,128], index: 1, kind: input, shape index: {}]   ;;  %s613_s2 = inlined_call_operand.vmem [shape: f32[1,128], index: 2, kind: input, shape index: {}]   ;;  %s614_s3 = inlined_call_operand.vmem [shape: bf16[128,128], index: 3, kind: input, shape index: {}]   ;;  %s615_s4 = inlined_call_operand.vmem [shape: f32[1,128], index: 4, kind: input, shape index: {}]   ;;  %s616_s5 = inlined_call_operand.vmem [shape: bf16[128,8], index: 5, kind: input, shape index: {}]   ;;  %s617_s6 = inlined_call_operand.vmem [shape: f32[1,8], index: 6, kind: input, shape index: {}]   ;;  %s618_s7 = inlined_call_operand.hbm [shape: f32[8,8], index: 7, kind: output, shape index: {}]  }
   0x1   :  { %v28_v0 = vld [vmem:[%s611_s0] sm:$0xff]  ;;  %415 = vset.pattern.permute.xlu0 %v468_v2  ;;  %417 = vset.pattern.permute.xlu1 %v469_v3  ;;  %v421_v5 = vld [vmem:[%s614_s3 + $0x8] sm:$0xff]   ;;  %v472_v7 = vmov 3   ;;  %v422_v8 = vld [vmem:[%s614_s3 + $0x10] sm:$0xff]  }
   0x2   :  { %v420_v1 = vld [vmem:[%s614_s3] sm:$0xff]   ;;  %32 = vperm.xlu0 %415, %v28_v0   ;;  %59 = vperm.xlu1 %417, %v28_v0   ;;  %v423_v9 = vld [vmem:[%s614_s3 + $0x18] sm:$0xff]  }
   0x3   :  { %368 = vmatprep.subr.bf16.mxu0 %v470_v4  ;;  %388 = vmatprep.subr.bf16.mxu1 %v470_v4 }
   0x4   :  { %369 = vmatpush3.bf16.msra.mxu0 %v420_v1 }
   0x5   :  { %370 = vmatprep.subr.bf16.mxu0 %v470_v4 }
   0x6   :  { %416 = vset.pattern.permute.xlu0 %v471_v6  ;;  %418 = vset.pattern.permute.xlu1 %v472_v7 }
   0x7   :  { %49 = vperm.xlu0 %416, %v28_v0   ;;  %69 = vperm.xlu1 %418, %v28_v0  }
   0x8   :  { %371 = vmatpush3.bf16.msra.mxu0 %v421_v5 }
   0x9   :  { %372 = vmatprep.subr.bf16.mxu0 %v470_v4 }
   0xb   :  { %419 = vset.pattern.permute.xlu0 %v472_v7 }
   0xc   :  { %373 = vmatpush3.bf16.msra.mxu0 %v422_v8 }
   0xd   :  { %374 = vmatprep.subr.bf16.mxu0 %v470_v4 }
   0xe   :  { %12 = vsyncpa [#allocation3], 0  ;;  %v424_v10 = vld [vmem:[%s614_s3 + $0x20] sm:$0xff]   ;;  %vm473_vm0 = vmmov 0   ;;  %v425_v11 = vld [vmem:[%s614_s3 + $0x28] sm:$0xff]   ;;  %v35_v18 = vlaneseq  ;;  %vm304_vm1 = vcmask 64512  }
   0xf   :  { %384 = vmatprep.mubr.msk.bf16.mxu0 %vm473_vm0, %v470_v4  ;;  %404 = vmatprep.mubr.msk.bf16.mxu1 %vm473_vm0, %v470_v4  ;;  %v426_v12 = vld [vmem:[%s614_s3 + $0x30] sm:$0xff]   ;;  %v427_v13 = vld [vmem:[%s614_s3 + $0x38] sm:$0xff]   ;;  %v428_v14 = vld [vmem:[%s616_s5] sm:$0xff]  }
  0x10   :  { %375 = vmatpush3.bf16.msra.mxu0 %v423_v9  ;;  %389 = vmatpush3.bf16.msra.mxu1 %v428_v14  ;;  %v429_v15 = vld [vmem:[%s616_s5 + $0x8] sm:$0xff]   ;;  %v430_v16 = vld [vmem:[%s616_s5 + $0x10] sm:$0xff]   ;;  %v431_v17 = vld [vmem:[%s616_s5 + $0x18] sm:$0xff]   ;;  %v36_v19 = vshrl.u32 %v35_v18, 7 }
  0x11   :  { %376 = vmatprep.subr.bf16.mxu0 %v470_v4  ;;  %390 = vmatprep.subr.bf16.mxu1 %v470_v4  ;;  %v29_v21 = vld [vmem:[%s612_s1] sm:$0xf]  ;;  %v433_v45 = vld [vmem:[%s616_s5 + $0x28] sm:$0xff]   ;;  %v434_v46 = vld [vmem:[%s616_s5 + $0x30] sm:$0xff]  }
  0x12   :  { %v37_v20 = vsub.s32 0, %v36_v19  ;;  %v54_v23 = vsub.s32 1, %v36_v19  ;;  %v64_v25 = vsub.s32 2, %v36_v19  ;;  %v74_v27 = vsub.s32 3, %v36_v19  ;;  %v331_v30 = vld [vmem:[%s613_s2] ss:$0 sm:$0xff] }
  0x13   :  { %v432_v44 = vld [vmem:[%s616_s5 + $0x20] sm:$0xff]   ;;  %v435_v47 = vld [vmem:[%s616_s5 + $0x38] sm:$0xff]  }
  0x14   :  { %377 = vmatpush3.bf16.msra.mxu0 %v424_v10  ;;  %391 = vmatpush3.bf16.msra.mxu1 %v429_v15  ;;  %v38_v22 = vrot.slane %v29_v21, %v37_v20  ;;  %v55_v29 = vrot.slane %v29_v21, %v54_v23  ;;  %v65_v31 = vrot.slane %v29_v21, %v64_v25  ;;  %v332_v48 = vld [vmem:[%s615_s4] ss:$0 sm:$0xff]  ;;  %s474_s4 = smov [#allocation2]  }
  0x15   :  { %378 = vmatprep.subr.bf16.mxu0 %v470_v4  ;;  %392 = vmatprep.subr.bf16.mxu1 %v470_v4  ;;  %v75_v32 = vrot.slane %v29_v21, %v74_v27  ;;  %v341_v56 = vld [vmem:[%s617_s6] ss:$0 sm:$0xff]  ;;  %s323_s5 = sshll.u32 %s474_s4, 4  ;;  %s324_s5 = int_to_ptr.vmem [resolvable:$true] %s323_s5 }
  0x16   :  { %s444_s6 = scalar_lea.vmem %s324_s5, 128  ;;  %p449_p1 = scmp.lt.s32.totalorder %s324_s5, %s324_s5 }
  0x17   :  { %p445_p0 = scmp.ne.s32.totalorder %s324_s5, %s444_s6  ;;  %p450_p2 = scmp.lt.s32.totalorder %s444_s6, %s444_s6 }
  0x18   :  { %379 = vmatpush3.bf16.msra.mxu0 %v425_v11  ;;  %393 = vmatpush3.bf16.msra.mxu1 %v430_v16 }
  0x19   :  { %380 = vmatprep.subr.bf16.mxu0 %v470_v4  ;;  %394 = vmatprep.subr.bf16.mxu1 %v470_v4  ;;  %p451_p3 = por %p450_p2, %p449_p1 }
  0x1b   :  { %p452_p4 = pnand %p451_p3, %p445_p0 }
  0x1c   :  { %381 = vmatpush3.bf16.msra.mxu0 %v426_v12  ;;  %395 = vmatpush3.bf16.msra.mxu1 %v431_v17 }
  0x1d   :  { %382 = vmatprep.subr.bf16.mxu0 %v470_v4  ;;  %396 = vmatprep.subr.bf16.mxu1 %v470_v4 }
  0x20   :  { %383 = vmatpush3.bf16.msra.mxu0 %v427_v13  ;;  %397 = vmatpush3.bf16.msra.mxu1 %v432_v44 }
  0x21   :  { %398 = vmatprep.subr.bf16.mxu1 %v470_v4 }
  0x24   :  { %399 = vmatpush3.bf16.msra.mxu1 %v433_v45 }
  0x25   :  { %400 = vmatprep.subr.bf16.mxu1 %v470_v4 }
  0x28   :  { %401 = vmatpush3.bf16.msra.mxu1 %v434_v46 }
  0x29   :  { %402 = vmatprep.subr.bf16.mxu1 %v470_v4 }
  0x2c   :  { %403 = vmatpush3.bf16.msra.mxu1 %v435_v47 }
  0x81   :  { %v33_v24 = vpop.permute.xlu0 %32  ;;  %v60_v26 = vpop.permute.xlu1 %59 }
  0x82   :  { %v39_v28 = vmul.f32 %v38_v22, %v33_v24  ;;  %v66_v37 = vmul.f32 %v65_v31, %v60_v26 }
  0x84   :  { %v47_v35 = vadd.f32 %v331_v30, %v39_v28 }
  0x86   :  { %v50_v33 = vpop.permute.xlu0 %49  ;;  %v70_v34 = vpop.permute.xlu1 %69 }
  0x87   :  { %v56_v36 = vmul.f32 %v55_v29, %v50_v33  ;;  %v76_v39 = vmul.f32 %v75_v32, %v70_v34 }
  0x89   :  { %v57_v38 = vadd.f32 %v56_v36, %v47_v35 }
  0x8b   :  { %v67_v40 = vadd.f32 %v66_v37, %v57_v38 }
  0x8d   :  { %v77_v41 = vadd.f32 %v76_v39, %v67_v40 }
  0x8f   :  { %v78_v42 = vpack.c.bf16 %v77_v41, %v77_v41 }
  0x91   :  { %436 = vtanh.bf16 %v78_v42 }
  0x9c   :  { %v437_v43 = vpop.eup %436 }
  0x9d   :  { %385 = vmatmul.mubr.bf16.vlgmr.msra.gmra.mrb[0].mxu0 %v437_v43 }
 0x170   :  { %v185_v49 = vpop.f32.mrb[0].mxu0 }
 0x171   :  { %v186_v50 = vadd.f32 %v332_v48, %v185_v49  ;;  %v386_v51 = vpop.f32.mrb[1].mxu0 }
 0x172   :  { %v188_v52 = vpop.f32.mrb[2].mxu0 }
 0x173   :  { %v191_v53 = vpack.c.bf16 %v186_v50, %v186_v50  ;;  %v387_v54 = vpop.f32.mrb[3].mxu0 }
 0x175   :  { %438 = vtanh.bf16 %v191_v53 }
 0x180   :  { %v439_v55 = vpop.eup %438 }
 0x181   :  { %405 = vmatmul.mubr.bf16.vlgmr.msra.gmra.mrb[0].mxu1 %v439_v55 }
 0x254   :  { %v298_v57 = vpop.f32.mrb[0].mxu1 }
 0x255   :  { %v299_v58 = vadd.f32 %v341_v56, %v298_v57  ;;  %v406_v59 = vpop.f32.mrb[1].mxu1 }
 0x256   :  { %v301_v60 = vpop.f32.mrb[2].mxu1 }
 0x257   :  { %v407_v61 = vpop.f32.mrb[3].mxu1  ;;  %v305_v62 = vsel %vm304_vm1, %v299_v58, -inf }
 0x258   :  { %306 = vmax.xlane.f32.xlu1 %v305_v62 }
 0x2e5   :  { %v307_v63 = vpop.xlane.xlu1 %306 }
 0x2e6   :  { %v308_v0 = vsub.f32 %v299_v58, %v307_v63 }
 0x2e8   :  { %v309_v1 = vmul.f32 1.442695, %v308_v0 }
 0x2ea   :  { %440 = vpow2.f32 %v309_v1 }
 0x2f4   :  { %v441_v2 = vpop.eup %440 }
 0x2f5   :  { %v311_v3 = vsel %vm304_vm1, %v441_v2, 0.0 }
 0x2f6   :  { %312 = vadd.xlane.f32.xlu0 %v311_v3 }
 0x383   :  { %v313_v4 = vpop.xlane.xlu0 %312 }
 0x384   :  { %442 = vrcp.f32 %v313_v4 }
 0x38e   :  { %v443_v5 = vpop.eup %442 }
 0x38f   :  { %v315_v6 = vmul.f32 %v443_v5, %v441_v2 }
 0x391   :  { %316 = vst.msk [vmem:[#allocation2] sm:$0xff] %vm304_vm1, %v315_v6 }
 0x392   :  { %455 = shalt.err (!%p452_p4)
}
 0x393   :  { %s456_s17 = scalar_lea.hbm %s618_s7, 128 }
 0x394   :  { %p457_p5 = scmp.ne.s32.totalorder %s618_s7, %s456_s17  ;;  %p460_p6 = scmp.lt.u32.totalorder %s456_s17, %s618_s7 }
 0x396   :  { %p462_p7 = pnand %p460_p6, %p457_p5 }
 0x398   :  { %465 = shalt.err (!%p462_p7)
}
 0x399   :  { %326 = dma.vmem_to_hbm [thread:$0]  %s324_s5, 128, %s618_s7, [#allocation3]  }
 0x39a   :  { %466 = dma.done.wait [#allocation3], 128  }
 0x39b   :  { %467 = vsyncadd [#allocation3], 4294967168 }
 0x39c   :  { %330 = vsyncpa [#allocation3], 1 }

</bundles_post_ra>
